<compile_context>
chip_gen: v6e
topology: v6e:2x2x1
jax: 0.10.0
libtpu: 0.0.40
codegen_flags: <defaults>
</compile_context>

<pallas_src>
import jax
import jax.numpy as jnp
from jax.experimental import pallas as pl
from jax.experimental.pallas import tpu as pltpu


_LANE = 128
_TARGET_BLOCK_BYTES = 4 * 1024 * 1024     # per-block, per-array footprint
_SINGLE_BLOCK_MAX_BYTES = 256 * 1024      # below this: one full-array block
_MIN_PIPELINE_STEPS = 4                   # keep the pipeline (and 2 TCs) busy
_VMEM_LIMIT_BYTES = 48 * 1024 * 1024      # 2 arrays x 2 bufs x 4 MiB = 16 MiB used
# Widest lane-dense column counts (multiples of 128) to try, descending.
_COL_CHOICES = (1024, 896, 768, 640, 512, 384, 256, 128)


def _tanh_kernel(x_ref, o_ref):
    # Elementwise tanh on the whole VMEM tile (transcendental -> EUP slot).
    # TODO(synk): on v7x, check whether the single EUP slot (not HBM) binds for
    # f32 tanh at 3.2 TB/s; if so a VPU polynomial approx is the next lever.
    o_ref[...] = jnp.tanh(x_ref[...])


def _sublane(dtype):
    # Sublane packing: 8 rows for 4-byte, 16 for 2-byte, 32 for 1-byte dtypes.
    return {4: 8, 2: 16, 1: 32}.get(jnp.dtype(dtype).itemsize, 8)


def _tanh_slab(flat):
    """tanh over a flat array whose length is a multiple of 128 (lane width)."""
    m = flat.shape[0]
    dtype = flat.dtype
    itemsize = jnp.dtype(dtype).itemsize

    # Widest lane-dense slab that divides m exactly (zero-copy reshape).
    cols = next(c for c in _COL_CHOICES if m % c == 0)
    rows = m // cols
    x2d = flat.reshape(rows, cols)

    sub = _sublane(dtype)
    if m * itemsize <= _SINGLE_BLOCK_MAX_BYTES:
        # Tiny input: a single full-array block (always (8,128)-legal).
        tile_rows = rows
    else:
        # Target ~4 MiB blocks, but cap so the grid has >= _MIN_PIPELINE_STEPS
        # steps for software pipelining / megacore sharding.
        target_rows = max(sub, _TARGET_BLOCK_BYTES // (cols * itemsize))
        cap = -(-rows // _MIN_PIPELINE_STEPS)
        tile_rows = min(target_rows, cap, rows)
        tile_rows = max(sub, tile_rows - tile_rows % sub)

    grid = (pl.cdiv(rows, tile_rows),)

    y2d = pl.pallas_call(
        _tanh_kernel,
        out_shape=jax.ShapeDtypeStruct((rows, cols), dtype),
        grid_spec=pltpu.PrefetchScalarGridSpec(
            num_scalar_prefetch=0,
            grid=grid,
            in_specs=[pl.BlockSpec((tile_rows, cols), lambda i: (i, 0))],
            out_specs=pl.BlockSpec((tile_rows, cols), lambda i: (i, 0)),
        ),
        compiler_params=pltpu.CompilerParams(
            # Independent blocks: lets v7x shard the grid across its 2 TCs.
            dimension_semantics=("parallel",),
            vmem_limit_bytes=_VMEM_LIMIT_BYTES,
        ),
        cost_estimate=pl.CostEstimate(
            flops=0, transcendentals=m, bytes_accessed=2 * m * itemsize),
    )(x2d)
    return y2d.reshape(m)


def _tanh_block_impl(x):
    """Applies tanh elementwise to a float array of any shape via Pallas."""
    orig_shape = x.shape
    n = x.size
    if n == 0:
        return x

    flat = x.reshape(-1)
    tail = n % _LANE
    if tail == 0:
        return _tanh_slab(flat).reshape(orig_shape)

    bulk = n - tail
    if bulk == 0:
        # Fewer than 128 elements: not worth a Pallas launch.
        return jnp.tanh(flat).astype(x.dtype).reshape(orig_shape)

    # Ragged: Pallas on the multiple-of-128 prefix, jnp.tanh on the <128 tail.
    y_bulk = _tanh_slab(flat[:bulk])
    y_tail = jnp.tanh(flat[bulk:]).astype(x.dtype)
    return jnp.concatenate([y_bulk, y_tail]).reshape(orig_shape)


tanh_block = jax.jit(_tanh_block_impl)


if __name__ == "__main__":
    key = jax.random.PRNGKey(0)

    # Small NCHW input consistent with a conv-style block: batch=2, C=4, H=W=16.
    x = jax.random.normal(key, (2, 4, 16, 16), dtype=jnp.float32)
    y = tanh_block(x)
    jax.block_until_ready(y)
    assert y.shape == x.shape and y.dtype == x.dtype
    assert jnp.max(jnp.abs(y - jnp.tanh(x))) < 1e-6

    # Ragged-size input (not a multiple of 128): exercises the bulk + tail path.
    x2 = jax.random.normal(jax.random.PRNGKey(1), (3, 5, 37, 19), dtype=jnp.float32)
    y2 = tanh_block(x2)
    jax.block_until_ready(y2)
    assert y2.shape == x2.shape and y2.dtype == x2.dtype
    assert jnp.max(jnp.abs(y2 - jnp.tanh(x2))) < 1e-6

    # Larger input (2 MiB): exercises the pipelined multi-step grid path.
    x3 = jax.random.normal(jax.random.PRNGKey(2), (8, 64, 32, 32), dtype=jnp.float32)
    y3 = tanh_block(x3)
    jax.block_until_ready(y3)
    assert y3.shape == x3.shape and y3.dtype == x3.dtype
    assert jnp.max(jnp.abs(y3 - jnp.tanh(x3))) < 2e-6

    print("KERNEL_OK")
</pallas_src>

<mosaic_0001>
module attributes {stable_mosaic.version = 11 : i64} {
  func.func @_tanh_kernel(%arg0: i32, %arg1: memref<2x1024xf32, #tpu.memory_space<vmem>>, %arg2: memref<2x1024xf32, #tpu.memory_space<vmem>>) attributes {dimension_semantics = [#tpu.dimension_semantics<parallel>], iteration_bounds = array<i64: 1>, scalar_prefetch = 0 : i64, scratch_operands = 0 : i64, tpu.core_type = #tpu.core_type<tc>, window_params = [{transform_indices = @transform_0, window_bounds = array<i64: 2, 1024>}, {transform_indices = @transform_1, window_bounds = array<i64: 2, 1024>}]} {
    %c0 = arith.constant 0 : index
    %c0_0 = arith.constant 0 : index
    %0 = vector.load %arg1[%c0, %c0_0] : memref<2x1024xf32, #tpu.memory_space<vmem>>, vector<2x1024xf32>
    %1 = math.tanh %0 : vector<2x1024xf32>
    %c0_1 = arith.constant 0 : index
    %c0_2 = arith.constant 0 : index
    %2 = vector.load %arg2[%c0_1, %c0_2] : memref<2x1024xf32, #tpu.memory_space<vmem>>, vector<2x1024xf32>
    tpu.vector_store %arg2[%c0_1, %c0_2], %1 {strides = array<i32>} : memref<2x1024xf32, #tpu.memory_space<vmem>>, vector<2x1024xf32>,
    return
  }
  func.func @transform_0(%arg0: i32) -> (i32, i32) {
    %c0_i32 = arith.constant 0 : i32
    %c0_i32_0 = arith.constant 0 : i32
    return %arg0, %c0_i32 : i32, i32
  }
  func.func @transform_1(%arg0: i32) -> (i32, i32) {
    %c0_i32 = arith.constant 0 : i32
    %c0_i32_0 = arith.constant 0 : i32
    return %arg0, %c0_i32 : i32, i32
  }
}

</mosaic_0001>

<bundles_post_ra>
// kernel: _tanh_block_impl.1
= control target key start
LH: loop header
LB: loop body
LE: loop exit
PB: predicated region body
PF: predicated region fallthrough
CT: control target
= control target key end

     0   :  { %s44_s0 = inlined_call_operand.vmem [shape: f32[2,1024], index: 0, kind: input, shape index: {}]   ;;  %s45_s1 = inlined_call_operand.vmem [shape: f32[2,1024], index: 1, kind: output, shape index: {}]  }
   0x1   :  { %v8_v0 = vld [vmem:[%s44_s0] sm:$0xff]  ;;  %v9_v1 = vld [vmem:[%s44_s0 + $0x8] sm:$0xff] }
   0x2   :  { %18 = vtanh.f32 %v8_v0 }
   0x3   :  { %20 = vtanh.f32 %v9_v1 }
   0xf   :  { %v19_v2 = vpop.eup %18 }
  0x10   :  { %v21_v3 = vpop.eup %20  ;;  %12 = vst [vmem:[%s45_s1] sm:$0xff] %v19_v2 }
  0x11   :  { %13 = vst [vmem:[%s45_s1 + $0x8] sm:$0xff] %v21_v3 }

</bundles_post_ra>
